<compile_context>
chip_gen: v7x
topology: tpu7x:2x2x1
jax: 0.10.0
libtpu: 0.0.40
codegen_flags: <defaults>
</compile_context>

<pallas_src>
import functools

import jax
import jax.numpy as jnp
from jax.experimental import pallas as pl
from jax.experimental.pallas import tpu as pltpu


def _unet_down_kernel(x_ref, w_ref, o_ref, *, hw, wo, normalize, eps,
                      neg_slope, spatial_on_lanes):
    # x_ref: (1, 8*Cin, Hs*Wo)   stride-phase packed padded input, one image.
    # w_ref: spatial_on_lanes: (2, Cout_t, 8*Cin)   else: (2, 8*Cin, Cout_t)
    # o_ref: spatial_on_lanes: (1, Cout_t, Ho*Wo)   else: (1, Ho*Wo, Cout_t)
    x = x_ref[0]                       # (8*Cin, Hs*Wo)
    x0 = x[:, 0:hw]                    # qi = 0 taps (lane-aligned slice)
    x1 = x[:, wo:wo + hw]              # qi = 1 taps (static offset Wo)

    if spatial_on_lanes:
        # acc: (Cout_t, HW) -- spatial axis on lanes.
        acc = jnp.dot(w_ref[0], x0, preferred_element_type=jnp.float32)
        acc = acc + jnp.dot(w_ref[1], x1, preferred_element_type=jnp.float32)
        red_axis = 1
    else:
        # acc: (HW, Cout_t) -- Cout on lanes (deep layers, HW < 128).
        # Contract dim 0 of both operands so the MXU output is lane-dense
        # in Cout.
        dn = (((0,), (0,)), ((), ()))
        acc = jax.lax.dot_general(x0, w_ref[0], dn,
                                  preferred_element_type=jnp.float32)
        acc = acc + jax.lax.dot_general(x1, w_ref[1], dn,
                                        preferred_element_type=jnp.float32)
        red_axis = 0

    if normalize:
        # One-pass InstanceNorm2d statistics (biased variance) in f32,
        # accumulated over bounded chunks so no full-size acc*acc temporary
        # is live.  TODO(synk): switch to a shifted/two-pass variance if
        # tolerances ever tighten (E[x^2]-E[x]^2 can cancel).
        inv_hw = 1.0 / hw
        chunk = 2048
        s = None
        s2 = None
        for start in range(0, hw, chunk):
            stop = min(start + chunk, hw)
            c = acc[:, start:stop] if red_axis == 1 else acc[start:stop, :]
            cs = jnp.sum(c, axis=red_axis, keepdims=True)
            cs2 = jnp.sum(c * c, axis=red_axis, keepdims=True)
            s = cs if s is None else s + cs
            s2 = cs2 if s2 is None else s2 + cs2
        mean = s * inv_hw
        var = s2 * inv_hw - mean * mean
        acc = (acc - mean) * jax.lax.rsqrt(var + eps)

    out = jnp.where(acc >= 0, acc, neg_slope * acc)      # LeakyReLU(0.2)
    o_ref[0] = out.astype(o_ref.dtype)


def _phase_pack(x, Wo, Hs, compute_dtype):
    """Stride-phase packing of the padded input -> (N, 8*Cin, Hs*Wo).

    The 8 variants (kernel-row parity pi, kernel-col parity pj, kernel-col
    half qj) are concatenated along the channel axis; variant (pi, pj, qj),
    channel ci, flat position h2*Wo + w holds xp[n, ci, 2*h2+pi, 2*(w+qj)+pj].
    ~2x the raw input (vs 4x for a full im2col), pure layout transform.
    """
    N, Cin, _, _ = x.shape
    xp = jnp.pad(x, ((0, 0), (0, 0), (1, 1), (1, 1)))
    variants = []
    for pi in (0, 1):
        for pj in (0, 1):
            for qj in (0, 1):
                v = xp[:, :, pi::2, (2 * qj + pj)::2][:, :, :Hs, :Wo]
                variants.append(v.reshape(N, Cin, Hs * Wo))
    return jnp.concatenate(variants, axis=1).astype(compute_dtype)


def _pack_weight(weight, spatial_on_lanes, compute_dtype):
    """(Cout, Cin, 4, 4) -> two big-K matrices keyed by the kernel-row half qi.

    Column order of the 8*Cin axis matches _phase_pack:
    (pi, pj, qj, ci) with v = pi*4 + pj*2 + qj.
    """
    Cout, Cin = weight.shape[0], weight.shape[1]
    w = weight.reshape(Cout, Cin, 2, 2, 2, 2)   # (co, ci, qi, pi, qj, pj)
    if spatial_on_lanes:
        w = jnp.transpose(w, (2, 0, 3, 5, 4, 1)).reshape(2, Cout, 8 * Cin)
    else:
        w = jnp.transpose(w, (2, 3, 5, 4, 1, 0)).reshape(2, 8 * Cin, Cout)
    return w.astype(compute_dtype)


def _vmem_capacity_bytes():
    try:
        return int(pltpu.get_tpu_info().vmem_capacity_bytes)
    except Exception:
        return 64 * 1024 * 1024   # conservative: v7x per-TensorCore VMEM


def unet_down(x, weight, *, normalize=True, eps=1e-5, neg_slope=0.2,
              compute_dtype=jnp.bfloat16, out_dtype=None):
    """UNetDown forward: Conv2d(4, s=2, p=1, bias=False) -> InstanceNorm2d -> LeakyReLU(0.2).

    x:      (N, Cin, H, W)   NCHW
    weight: (Cout, Cin, 4, 4)
    returns (N, Cout, H//2, W//2) NCHW in `out_dtype` (default: compute_dtype).
    """
    # TODO(synk): dropout > 0 variant of the module is not implemented
    # (module default dropout=0.0 is the identity).
    N, Cin, H, W = x.shape
    Cout, Cin_w, kh, kw = weight.shape
    assert Cin == Cin_w and (kh, kw) == (4, 4)
    assert H % 2 == 0 and W % 2 == 0
    Ho, Wo = H // 2, W // 2
    Hs = Ho + 1                 # rows per stride-phase of the padded input
    HW = Ho * Wo
    K = 8 * Cin                 # contraction depth of the 2 fused matmuls

    if out_dtype is None:
        out_dtype = compute_dtype

    # Deep layers (Ho*Wo < 128): put Cout on the lane axis instead of the
    # spatial axis so stores and the MXU output stay lane-dense.
    spatial_on_lanes = HW >= 128

    # TODO(synk): the phase-pack below is an extra HBM read+write of the
    # (packed) input; fuse it into the producer of x, or do in-kernel strided
    # DMA from raw NCHW, to remove ~30-50% of the end-to-end traffic.
    xr = _phase_pack(x, Wo, Hs, compute_dtype)            # (N, 8*Cin, Hs*Wo)
    w_r = _pack_weight(weight, spatial_on_lanes, compute_dtype)

    # --- VMEM budgeting: derive the Cout tile and vmem_limit_bytes from the
    # actual block sizes rather than hardcoding a cap.
    c_item = jnp.dtype(compute_dtype).itemsize
    o_item = jnp.dtype(out_dtype).itemsize
    vmem_cap = _vmem_capacity_bytes()
    in_block_bytes = K * (Hs * Wo) * c_item

    def _tile_bytes(t):
        w_b = 2 * t * K * c_item
        out_b = t * HW * o_item
        acc_b = t * HW * 4
        # double-buffered weight/output blocks + f32 accumulator + headroom
        # for epilogue temporaries of comparable size.
        return 2 * w_b + 2 * out_b + 2 * acc_b

    fixed_bytes = 2 * in_block_bytes + (2 << 20)          # double-buffered input
    budget = int(0.85 * vmem_cap)

    cands = sorted({t for t in (256, 128, 64) if Cout % t == 0} | {Cout},
                   reverse=True)
    if not spatial_on_lanes:
        # Cout tile is the lane dim of the output block in flipped mode.
        cands = [t for t in cands if t % 128 == 0 or t == Cout]
    cout_tile = cands[-1]
    for t in cands:
        if fixed_bytes + _tile_bytes(t) <= budget:
            cout_tile = t
            break
    n_ct = Cout // cout_tile

    needed = fixed_bytes + _tile_bytes(cout_tile)
    # TODO(synk): if `needed` still exceeds the chip's VMEM (huge-spatial
    # layers on v7x), a spatial grid axis with two-pass instance norm is
    # required; not implemented here.
    vmem_limit = int(min(vmem_cap, max(32 << 20, needed * 5 // 4)))

    kernel = functools.partial(
        _unet_down_kernel, hw=HW, wo=Wo, normalize=normalize, eps=eps,
        neg_slope=neg_slope, spatial_on_lanes=spatial_on_lanes)

    in_specs = [pl.BlockSpec((1, K, Hs * Wo), lambda n, c: (n, 0, 0))]
    if spatial_on_lanes:
        in_specs.append(pl.BlockSpec((2, cout_tile, K), lambda n, c: (0, c, 0)))
        out_shape = jax.ShapeDtypeStruct((N, Cout, HW), out_dtype)
        out_spec = pl.BlockSpec((1, cout_tile, HW), lambda n, c: (n, c, 0))
    else:
        in_specs.append(pl.BlockSpec((2, K, cout_tile), lambda n, c: (0, 0, c)))
        out_shape = jax.ShapeDtypeStruct((N, HW, Cout), out_dtype)
        out_spec = pl.BlockSpec((1, HW, cout_tile), lambda n, c: (n, 0, c))

    # v7x megacore: split the grid on the batch axis (not Cout) so the two
    # TensorCores do not both stream the same multi-MiB input block; the Cout
    # axis runs sequentially per core and reuses the resident input block.
    dim_sem = ("parallel", "arbitrary") if N >= 2 else ("parallel", "parallel")

    out_flat = pl.pallas_call(
        kernel,
        out_shape=out_shape,
        grid_spec=pltpu.PrefetchScalarGridSpec(
            num_scalar_prefetch=0,
            grid=(N, n_ct),
            in_specs=in_specs,
            out_specs=out_spec,
        ),
        compiler_params=pltpu.CompilerParams(
            dimension_semantics=dim_sem,
            vmem_limit_bytes=vmem_limit,
        ),
    )(xr, w_r)

    if spatial_on_lanes:
        # (N, Cout, Ho*Wo) -> NCHW is a free reshape (no transpose pass).
        return out_flat.reshape(N, Cout, Ho, Wo)
    # Deep layers: the result is tiny, the NCHW transpose is cheap compared
    # with lane-dense in-kernel stores.
    return jnp.transpose(out_flat, (0, 2, 1)).reshape(N, Cout, Ho, Wo)


def _reference(x, weight, *, normalize=True, eps=1e-5, neg_slope=0.2):
    # Pure-JAX reference: conv -> (instance norm) -> leaky relu.
    y = jax.lax.conv_general_dilated(
        x, weight,
        window_strides=(2, 2),
        padding=((1, 1), (1, 1)),
        dimension_numbers=("NCHW", "OIHW", "NCHW"),
    )
    if normalize:
        mean = jnp.mean(y, axis=(2, 3), keepdims=True)
        var = jnp.mean((y - mean) ** 2, axis=(2, 3), keepdims=True)
        y = (y - mean) * jax.lax.rsqrt(var + eps)
    return jnp.where(y >= 0, y, neg_slope * y)


if __name__ == "__main__":
    key = jax.random.PRNGKey(0)
    kx1, kw1, kx2, kw2 = jax.random.split(key, 4)

    # --- Shape A: deep-layer-style (Ho*Wo = 64 < 128 -> Cout-on-lanes path).
    N, Cin, H, W, Cout = 2, 4, 16, 16, 8
    x = jax.random.normal(kx1, (N, Cin, H, W), dtype=jnp.float32)
    w = jax.random.normal(kw1, (Cout, Cin, 4, 4), dtype=jnp.float32) * (
        1.0 / jnp.sqrt(float(Cin * 16)))

    ref = jax.block_until_ready(_reference(x, w))

    # f32 compute path: tight tolerance, f32 output.
    out_f32 = jax.block_until_ready(
        unet_down(x, w, compute_dtype=jnp.float32))
    assert out_f32.shape == (N, Cout, H // 2, W // 2), out_f32.shape
    assert out_f32.dtype == jnp.float32
    assert jnp.allclose(out_f32, ref, atol=1e-3, rtol=1e-3), float(
        jnp.max(jnp.abs(out_f32 - ref)))

    # bf16 compute path (MXU-native) with bf16 writeback: loose tolerance.
    out_bf16 = jax.block_until_ready(unet_down(x, w))
    assert out_bf16.dtype == jnp.bfloat16
    assert jnp.allclose(out_bf16.astype(jnp.float32), ref,
                        atol=1e-1, rtol=1e-1), float(
        jnp.max(jnp.abs(out_bf16.astype(jnp.float32) - ref)))

    # normalize=False branch (conv -> leaky relu only).
    ref_nn = jax.block_until_ready(_reference(x, w, normalize=False))
    out_nn = jax.block_until_ready(
        unet_down(x, w, normalize=False, compute_dtype=jnp.float32))
    assert jnp.allclose(out_nn, ref_nn, atol=1e-3, rtol=1e-3), float(
        jnp.max(jnp.abs(out_nn - ref_nn)))

    # --- Shape B: first-layer-style (Cin=3, Ho*Wo = 256 -> spatial-on-lanes).
    N2, Cin2, H2, W2, Cout2 = 2, 3, 32, 32, 64
    x2 = jax.random.normal(kx2, (N2, Cin2, H2, W2), dtype=jnp.float32)
    w2 = jax.random.normal(kw2, (Cout2, Cin2, 4, 4), dtype=jnp.float32) * (
        1.0 / jnp.sqrt(float(Cin2 * 16)))
    ref2 = jax.block_until_ready(_reference(x2, w2))
    out2 = jax.block_until_ready(
        unet_down(x2, w2, compute_dtype=jnp.float32))
    assert out2.shape == (N2, Cout2, H2 // 2, W2 // 2), out2.shape
    assert jnp.allclose(out2, ref2, atol=1e-3, rtol=1e-3), float(
        jnp.max(jnp.abs(out2 - ref2)))

    print("KERNEL_OK")
</pallas_src>

<mosaic_0001>
module attributes {stable_mosaic.version = 11 : i64} {
  func.func @_unet_down_kernel(%arg0: i32, %arg1: i32, %arg2: memref<1x32x72xf32, #tpu.memory_space<vmem>>, %arg3: memref<2x32x8xf32, #tpu.memory_space<vmem>>, %arg4: memref<1x64x8xf32, #tpu.memory_space<vmem>>) attributes {dimension_semantics = [#tpu.dimension_semantics<parallel>, #tpu.dimension_semantics<arbitrary>], iteration_bounds = array<i64: 2, 1>, scalar_prefetch = 0 : i64, scratch_operands = 0 : i64, tpu.core_type = #tpu.core_type<tc>, window_params = [{transform_indices = @transform_0, window_bounds = array<i64: 1, 32, 72>}, {transform_indices = @transform_1, window_bounds = array<i64: 2, 32, 8>}, {transform_indices = @transform_2, window_bounds = array<i64: 1, 64, 8>}]} {
    %c0 = arith.constant 0 : index
    %c0_0 = arith.constant 0 : index
    %c0_1 = arith.constant 0 : index
    %0 = vector.load %arg2[%c0, %c0_0, %c0_1] : memref<1x32x72xf32, #tpu.memory_space<vmem>>, vector<1x32x72xf32>
    %1 = vector.shape_cast %0 : vector<1x32x72xf32> to vector<32x72xf32>
    %2 = vector.extract_strided_slice %1 {offsets = [0, 0], sizes = [32, 64], strides = [1, 1]} : vector<32x72xf32> to vector<32x64xf32>
    %3 = vector.extract_strided_slice %1 {offsets = [0, 8], sizes = [32, 64], strides = [1, 1]} : vector<32x72xf32> to vector<32x64xf32>
    %c0_2 = arith.constant 0 : index
    %c0_3 = arith.constant 0 : index
    %c0_4 = arith.constant 0 : index
    %4 = vector.load %arg3[%c0_2, %c0_3, %c0_4] : memref<2x32x8xf32, #tpu.memory_space<vmem>>, vector<1x32x8xf32>
    %5 = vector.shape_cast %4 : vector<1x32x8xf32> to vector<32x8xf32>
    %cst = arith.constant dense<0.000000e+00> : vector<64x8xf32>
    %6 = tpu.matmul %2, %5, %cst {dimension_numbers = #tpu.dot_dimension_numbers<[0], [0], [1], [1], [0, 1, 1, 1], [], []>} : vector<32x64xf32>, vector<32x8xf32>, vector<64x8xf32> -> vector<64x8xf32>
    %c1 = arith.constant 1 : index
    %c0_5 = arith.constant 0 : index
    %c0_6 = arith.constant 0 : index
    %7 = vector.load %arg3[%c1, %c0_5, %c0_6] : memref<2x32x8xf32, #tpu.memory_space<vmem>>, vector<1x32x8xf32>
    %8 = vector.shape_cast %7 : vector<1x32x8xf32> to vector<32x8xf32>
    %cst_7 = arith.constant dense<0.000000e+00> : vector<64x8xf32>
    %9 = tpu.matmul %3, %8, %cst_7 {dimension_numbers = #tpu.dot_dimension_numbers<[0], [0], [1], [1], [0, 1, 1, 1], [], []>} : vector<32x64xf32>, vector<32x8xf32>, vector<64x8xf32> -> vector<64x8xf32>
    %10 = arith.addf %6, %9 : vector<64x8xf32>
    %cst_8 = arith.constant dense<0.000000e+00> : vector<8xf32>
    %11 = vector.multi_reduction <add>, %10, %cst_8 [0] : vector<64x8xf32> to vector<8xf32>
    %12 = vector.shape_cast %11 : vector<8xf32> to vector<1x8xf32>
    %13 = arith.mulf %10, %10 : vector<64x8xf32>
    %cst_9 = arith.constant dense<0.000000e+00> : vector<8xf32>
    %14 = vector.multi_reduction <add>, %13, %cst_9 [0] : vector<64x8xf32> to vector<8xf32>
    %15 = vector.shape_cast %14 : vector<8xf32> to vector<1x8xf32>
    %cst_10 = arith.constant 1.562500e-02 : f32
    %16 = vector.broadcast %cst_10 : f32 to vector<1x8xf32>
    %17 = arith.mulf %12, %16 : vector<1x8xf32>
    %cst_11 = arith.constant 1.562500e-02 : f32
    %18 = vector.broadcast %cst_11 : f32 to vector<1x8xf32>
    %19 = arith.mulf %15, %18 : vector<1x8xf32>
    %20 = arith.mulf %17, %17 : vector<1x8xf32>
    %21 = arith.subf %19, %20 : vector<1x8xf32>
    %22 = vector.broadcast %17 : vector<1x8xf32> to vector<64x8xf32>
    %23 = arith.subf %10, %22 : vector<64x8xf32>
    %cst_12 = arith.constant 9.99999974E-6 : f32
    %24 = vector.broadcast %cst_12 : f32 to vector<1x8xf32>
    %25 = arith.addf %21, %24 : vector<1x8xf32>
    %26 = math.rsqrt %25 : vector<1x8xf32>
    %27 = vector.broadcast %26 : vector<1x8xf32> to vector<64x8xf32>
    %28 = arith.mulf %23, %27 : vector<64x8xf32>
    %cst_13 = arith.constant 0.000000e+00 : f32
    %29 = vector.broadcast %cst_13 : f32 to vector<64x8xf32>
    %30 = arith.cmpf oge, %28, %29 : vector<64x8xf32>
    %cst_14 = arith.constant 2.000000e-01 : f32
    %31 = vector.broadcast %cst_14 : f32 to vector<64x8xf32>
    %32 = arith.mulf %31, %28 : vector<64x8xf32>
    %33 = arith.select %30, %28, %32 : vector<64x8xi1>, vector<64x8xf32>
    %c0_15 = arith.constant 0 : index
    %c0_16 = arith.constant 0 : index
    %c0_17 = arith.constant 0 : index
    %34 = vector.load %arg4[%c0_15, %c0_16, %c0_17] : memref<1x64x8xf32, #tpu.memory_space<vmem>>, vector<1x64x8xf32>
    %35 = vector.shape_cast %34 : vector<1x64x8xf32> to vector<64x8xf32>
    %36 = vector.shape_cast %33 : vector<64x8xf32> to vector<1x64x8xf32>
    tpu.vector_store %arg4[%c0_15, %c0_16, %c0_17], %36 {strides = array<i32>} : memref<1x64x8xf32, #tpu.memory_space<vmem>>, vector<1x64x8xf32>,
    return
  }
  func.func @transform_0(%arg0: i32, %arg1: i32) -> (i32, i32, i32) {
    %c0_i32 = arith.constant 0 : i32
    %c0_i32_0 = arith.constant 0 : i32
    %c0_i32_1 = arith.constant 0 : i32
    return %arg0, %c0_i32, %c0_i32_0 : i32, i32, i32
  }
  func.func @transform_1(%arg0: i32, %arg1: i32) -> (i32, i32, i32) {
    %c0_i32 = arith.constant 0 : i32
    %c0_i32_0 = arith.constant 0 : i32
    %c0_i32_1 = arith.constant 0 : i32
    return %c0_i32, %c0_i32_0, %arg1 : i32, i32, i32
  }
  func.func @transform_2(%arg0: i32, %arg1: i32) -> (i32, i32, i32) {
    %c0_i32 = arith.constant 0 : i32
    %c0_i32_0 = arith.constant 0 : i32
    return %arg0, %c0_i32, %arg1 : i32, i32, i32
  }
}

</mosaic_0001>

<bundles_post_ra>
// kernel: tpu_custom_call.1
= control target key start
LH: loop header
LB: loop body
LE: loop exit
PB: predicated region body
PF: predicated region fallthrough
CT: control target
= control target key end

     0   :  { %s921_s9 = smov 0   ;;  %s923_s10 = smov 0   ;;  %s1054_s0 = inlined_call_operand.vmem [shape: f32[2,32,72], index: 0, kind: input, shape index: {}]   ;;  %s1055_s1 = inlined_call_operand.vmem [shape: f32[2,32,8], index: 1, kind: input, shape index: {}]   ;;  %s1056_s2 = inlined_call_operand.vmem [shape: f32[2,64,8], index: 2, kind: output, shape index: {}]  }
   0x1   :  { %s925_s11 = smov 0  }
   0x2 LB: > { %s24_s12 = sadd.s32 1, %s899_s10  ;;  %p736_p0 = scmp.ge.s32.totalorder %s903_s11, 1  ;;  %s903_s11 = sphi %s925_s11, %s12_s11   ;;  %s899_s10 = sphi %s923_s10, %s1058_s10   ;;  %s895_s9 = sphi %s921_s9, %s1057_s9  }
   0x3   : > { %p26_p1 = scmp.ge.s32.totalorder %s24_s12, 2  ;;  %p135_p2 = scmp.lt.s32.totalorder %s903_s11, 3 }
   0x5   : > { %s1060_s12 = smov (%p26_p1, %s24_s12), 0  ;;  %p136_p3 = pnand %p736_p0, %p135_p2 }
   0x6   : > { %p164_p4 = scmp.lt.s32.totalorder (!%p136_p3), %s895_s9, 1  ;;  %s905_s17 = smov (!%p136_p3), 120   ;;  %v185_v4 = vld [vmem:[%s1055_s1] sm:$0xff] (!%p136_p3)  ;;  %v186_v5 = vld [vmem:[%s1055_s1 + $0x8] sm:$0xff] (!%p136_p3)  ;;  %v187_v10 = vld [vmem:[%s1055_s1 + $0x10] sm:$0xff] (!%p136_p3)  ;;  %vm242_vm0 = vcmask (!%p136_p3), 261120  }
   0x7   : > { %139 = sbr.rel (%p136_p3) target bundleno = 553 (0x229), region = 28  ;;  %v741_v6 = vld [vmem:[%s1055_s1 + $0x20] sm:$0xff] (!%p136_p3)  ;;  %v742_v7 = vld [vmem:[%s1055_s1 + $0x28] sm:$0xff] (!%p136_p3)  ;;  %v837_v8 = vpack.c.bf16 (!%p136_p3), %v186_v5, %v185_v4  ;;  %v188_v11 = vld [vmem:[%s1055_s1 + $0x18] sm:$0xff] (!%p136_p3)  ;;  %vm533_vm1 = vcmask (!%p136_p3), 64512  }
   0x8   : > { %v829_v9 = vpack.c.bf16 (!%p136_p3), %v742_v7, %v741_v6  ;;  %v841_v12 = vpack.c.bf16 (!%p136_p3), %v188_v11, %v187_v10  ;;  %v743_v13 = vld [vmem:[%s1055_s1 + $0x30] sm:$0xff] (!%p136_p3)  ;;  %v744_v14 = vld [vmem:[%s1055_s1 + $0x38] sm:$0xff] (!%p136_p3) }
   0x9   : > { %838 = vmatprep.subr.bf16.mxu0 (!%p136_p3), %v837_v8  ;;  %v833_v16 = vpack.c.bf16 (!%p136_p3), %v744_v14, %v743_v13 }
   0xa   : > { %830 = vmatprep.subr.bf16.mxu1 (!%p136_p3), %v829_v9  ;;  %840 = vmatpush3.bf16.msra.mxu0 (!%p136_p3), %v837_v8 }
   0xb   : > { %832 = vmatpush3.bf16.msra.mxu1 (!%p136_p3), %v829_v9  ;;  %842 = vmatprep.subr.bf16.mxu0 (!%p136_p3), %v841_v12 }
   0xc   : > { %834 = vmatprep.subr.bf16.mxu1 (!%p136_p3), %v833_v16 }
   0xe   : > { %s1062_s9 = smov (!%p164_p4, %s895_s9), 1  ;;  %844 = vmatpush3.bf16.msra.mxu0 %v841_v12 }
   0xf   : > { %s763_s13 = sshll.u32 %s1062_s9, 5  ;;  %836 = vmatpush3.bf16.msra.mxu1 %v833_v16  ;;  %s764_s6 = sshll.u32 %s1062_s9, 6 }
  0x10   : > { %s168_s16 = scalar_lea.vmem %s1054_s0, %s763_s13  ;;  %s180_s13 = scalar_lea.vmem %s1056_s2, %s764_s6 }
  0x11   : > { %v181_v0 = vld [vmem:[%s168_s16] sm:$0xff]  ;;  %v182_v1 = vld [vmem:[%s168_s16 + $0x8] sm:$0xff]  ;;  %v183_v2 = vld [vmem:[%s168_s16 + $0x10] sm:$0xff] }
  0x12   : > { %198 = vrot.lane.b32.xlu0 %v181_v0, %s905_s17  ;;  %202 = vrot.lane.b32.xlu1 %v183_v2, %s905_s17  ;;  %v184_v3 = vld [vmem:[%s168_s16 + $0x18] sm:$0xff] }
  0x16   : > { %200 = vrot.lane.b32.xlu0 %v182_v1, %s905_s17  ;;  %204 = vrot.lane.b32.xlu1 %v184_v3, %s905_s17 }
  0x3f   : > { %372 = vxpose.xlu1.b32.start [1/4] (short) (narrow) %v181_v0, 64 }
  0x43   : > { %373 = vxpose.xlu1.b32.cont [2/4] (short) (narrow) %v182_v1, 64 }
  0x47   : > { %374 = vxpose.xlu1.b32.cont [3/4] (short) (narrow) %v183_v2, 64 }
  0x4b   : > { %375 = vxpose.xlu1.b32.end [4/4] (short) (narrow) %v184_v3, 64 }
  0x84   : > { %v199_v15 = vpop.permute.xlu0 %198  ;;  %v203_v18 = vpop.permute.xlu1 %202 }
  0x85   : > { %210 = vxpose.xlu0.b32.start [1/4] (short) (narrow) %v199_v15, 64 }
  0x88   : > { %v201_v17 = vpop.permute.xlu0 %200  ;;  %v205_v19 = vpop.permute.xlu1 %204 }
  0x89   : > { %211 = vxpose.xlu0.b32.cont [2/4] (short) (narrow) %v201_v17, 64 }
  0x8d   : > { %212 = vxpose.xlu0.b32.cont [3/4] (short) (narrow) %v203_v18, 64 }
  0x91   : > { %213 = vxpose.xlu0.b32.end [4/4] (short) (narrow) %v205_v19, 64 }
  0xbf   : > { %v388_v20 = vpop.trf.xlu1 }
  0xc0   : > { %817 = vmatprep.mubr.msk.f32.mxu0 %vm242_vm0, %v388_v20 }
  0xc3   : > { %v389_v21 = vpop.trf.xlu1 }
  0xc4   : > { %818 = vmatmul.mubr.msk.f32.vlgmr.msra.gmra.mrb[0].mxu0 %vm242_vm0, %v389_v21 }
  0xc7   : > { %v390_v22 = vpop.trf.xlu1 }
  0xc8   : > { %820 = vmatprep.mubr.msk.f32.mxu0 %vm242_vm0, %v390_v22 }
  0xcb   : > { %v391_v23 = vpop.trf.xlu1 }
  0xcc   : > { %821 = vmatmul.mubr.msk.f32.gmra.mrb[2].mxu0 %vm242_vm0, %v391_v23 }
  0xcf   : > { %v392_v24 = vpop.trf.xlu1 }
  0xd0   : > { %823 = vmatprep.mubr.msk.f32.mxu0 %vm242_vm0, %v392_v24 }
  0xd3   : > { %v393_v25 = vpop.trf.xlu1 }
  0xd4   : > { %824 = vmatmul.mubr.msk.f32.gmra.mrb[4].mxu0 %vm242_vm0, %v393_v25 }
  0xd7   : > { %v394_v26 = vpop.trf.xlu1 }
  0xd8   : > { %826 = vmatprep.mubr.msk.f32.mxu0 %vm242_vm0, %v394_v26 }
  0xdb   : > { %v395_v27 = vpop.trf.xlu1 }
  0xdc   : > { %827 = vmatmul.mubr.msk.f32.gmra.mrb[6].mxu0 %vm242_vm0, %v395_v27 }
 0x105   : > { %v226_v28 = vpop.trf.xlu0 }
 0x106   : > { %797 = vmatprep.mubr.msk.f32.mxu1 %vm242_vm0, %v226_v28 }
 0x109   : > { %v227_v29 = vpop.trf.xlu0 }
 0x10a   : > { %798 = vmatmul.mubr.msk.f32.vlgmr.msra.gmra.mrb[0].mxu1 %vm242_vm0, %v227_v29 }
 0x10d   : > { %v228_v30 = vpop.trf.xlu0 }
 0x10e   : > { %800 = vmatprep.mubr.msk.f32.mxu1 %vm242_vm0, %v228_v30 }
 0x111   : > { %v229_v31 = vpop.trf.xlu0 }
 0x112   : > { %801 = vmatmul.mubr.msk.f32.gmra.mrb[2].mxu1 %vm242_vm0, %v229_v31 }
 0x115   : > { %v230_v32 = vpop.trf.xlu0 }
 0x116   : > { %803 = vmatprep.mubr.msk.f32.mxu1 %vm242_vm0, %v230_v32 }
 0x119   : > { %v231_v33 = vpop.trf.xlu0 }
 0x11a   : > { %804 = vmatmul.mubr.msk.f32.gmra.mrb[4].mxu1 %vm242_vm0, %v231_v33 }
 0x11d   : > { %v232_v34 = vpop.trf.xlu0 }
 0x11e   : > { %806 = vmatprep.mubr.msk.f32.mxu1 %vm242_vm0, %v232_v34 }
 0x121   : > { %v233_v35 = vpop.trf.xlu0 }
 0x122   : > { %807 = vmatmul.mubr.msk.f32.gmra.mrb[6].mxu1 %vm242_vm0, %v233_v35 }
 0x197   : > { %v819_v36 = vpop.f32.mrb[0].mxu0 }
 0x198   : > { %v494_v37 = vpop.f32.mrb[1].mxu0 }
 0x19f   : > { %v822_v38 = vpop.f32.mrb[2].mxu0 }
 0x1a0   : > { %v504_v39 = vpop.f32.mrb[3].mxu0 }
 0x1a7   : > { %v825_v40 = vpop.f32.mrb[4].mxu0 }
 0x1a8   : > { %v514_v41 = vpop.f32.mrb[5].mxu0 }
 0x1af   : > { %v828_v42 = vpop.f32.mrb[6].mxu0 }
 0x1b0   : > { %v524_v43 = vpop.f32.mrb[7].mxu0 }
 0x1dd   : > { %v799_v44 = vpop.f32.mrb[0].mxu1 }
 0x1de   : > { %v985_v45 = vadd.f32 %v819_v36, %v799_v44  ;;  %v333_v46 = vpop.f32.mrb[1].mxu1 }
 0x1df   : > { %v987_v47 = vadd.f32 %v494_v37, %v333_v46 }
 0x1e0   : > { %v535_v48 = vsel %vm533_vm1, %v985_v45, 0.0  ;;  %v556_v49 = vmul.f32 %v985_v45, %v985_v45 }
 0x1e1   : > { %v534_v50 = vsel %vm533_vm1, %v987_v47, 0.0  ;;  %v555_v51 = vmul.f32 %v987_v47, %v987_v47 }
 0x1e2   : > { %v564_v52 = vsel %vm533_vm1, %v556_v49, 0.0  ;;  %v536_v53 = vadd.f32 %v535_v48, %v534_v50 }
 0x1e3   : > { %v563_v54 = vsel %vm533_vm1, %v555_v51, 0.0 }
 0x1e4   : > { %v565_v55 = vadd.f32 %v564_v52, %v563_v54 }
 0x1e5   : > { %v802_v56 = vpop.f32.mrb[2].mxu1 }
 0x1e6   : > { %v999_v57 = vadd.f32 %v822_v38, %v802_v56  ;;  %v343_v58 = vpop.f32.mrb[3].mxu1 }
 0x1e7   : > { %v1001_v59 = vadd.f32 %v504_v39, %v343_v58 }
 0x1e8   : > { %v558_v60 = vmul.f32 %v999_v57, %v999_v57  ;;  %v539_v0 = vsel %vm533_vm1, %v999_v57, 0.0 }
 0x1e9   : > { %v537_v61 = vsel %vm533_vm1, %v1001_v59, 0.0  ;;  %v557_v62 = vmul.f32 %v1001_v59, %v1001_v59 }
 0x1ea   : > { %v538_v63 = vadd.f32 %v537_v61, %v536_v53  ;;  %v568_v4 = vsel %vm533_vm1, %v558_v60, 0.0 }
 0x1eb   : > { %v566_v1 = vsel %vm533_vm1, %v557_v62, 0.0 }
 0x1ec   : > { %v567_v2 = vadd.f32 %v566_v1, %v565_v55  ;;  %v540_v3 = vadd.f32 %v539_v0, %v538_v63 }
 0x1ed   : > { %v805_v5 = vpop.f32.mrb[4].mxu1 }
 0x1ee   : > { %v520_v6 = vadd.f32 %v825_v40, %v805_v5  ;;  %v353_v7 = vpop.f32.mrb[5].mxu1  ;;  %v569_v8 = vadd.f32 %v568_v4, %v567_v2 }
 0x1ef   : > { %v515_v9 = vadd.f32 %v514_v41, %v353_v7 }
 0x1f0   : > { %v560_v10 = vmul.f32 %v520_v6, %v520_v6  ;;  %v543_v14 = vsel %vm533_vm1, %v520_v6, 0.0 }
 0x1f1   : > { %v541_v11 = vsel %vm533_vm1, %v515_v9, 0.0  ;;  %v559_v12 = vmul.f32 %v515_v9, %v515_v9 }
 0x1f2   : > { %v542_v13 = vadd.f32 %v541_v11, %v540_v3  ;;  %v572_v18 = vsel %vm533_vm1, %v560_v10, 0.0 }
 0x1f3   : > { %v570_v15 = vsel %vm533_vm1, %v559_v12, 0.0 }
 0x1f4   : > { %v571_v16 = vadd.f32 %v570_v15, %v569_v8  ;;  %v544_v17 = vadd.f32 %v543_v14, %v542_v13 }
 0x1f5   : > { %v808_v19 = vpop.f32.mrb[6].mxu1 }
 0x1f6   : > { %v530_v20 = vadd.f32 %v828_v42, %v808_v19  ;;  %v363_v21 = vpop.f32.mrb[7].mxu1  ;;  %v573_v22 = vadd.f32 %v572_v18, %v571_v16 }
 0x1f7   : > { %v525_v23 = vadd.f32 %v524_v43, %v363_v21 }
 0x1f8   : > { %v562_v24 = vmul.f32 %v530_v20, %v530_v20  ;;  %v547_v28 = vsel %vm533_vm1, %v530_v20, 0.0 }
 0x1f9   : > { %v545_v25 = vsel %vm533_vm1, %v525_v23, 0.0  ;;  %v561_v26 = vmul.f32 %v525_v23, %v525_v23 }
 0x1fa   : > { %v546_v27 = vadd.f32 %v545_v25, %v544_v17  ;;  %v576_v32 = vsel %vm533_vm1, %v562_v24, 0.0 }
 0x1fb   : > { %v574_v29 = vsel %vm533_vm1, %v561_v26, 0.0 }
 0x1fc   : > { %v548_v30 = vadd.f32 %v547_v28, %v546_v27  ;;  %v575_v31 = vadd.f32 %v574_v29, %v573_v22 }
 0x1fe   : > { %v549_v33 = vrot.slane %v548_v30, 4  ;;  %v577_v34 = vadd.f32 %v576_v32, %v575_v31 }
 0x200   : > { %v550_v35 = vadd.f32 %v549_v33, %v548_v30  ;;  %v578_v36 = vrot.slane %v577_v34, 4 }
 0x202   : > { %v551_v37 = vrot.slane %v550_v35, 2  ;;  %v579_v38 = vadd.f32 %v578_v36, %v577_v34 }
 0x204   : > { %v552_v39 = vadd.f32 %v551_v37, %v550_v35  ;;  %v580_v40 = vrot.slane %v579_v38, 2 }
 0x206   : > { %v553_v41 = vrot.slane %v552_v39, 1  ;;  %v581_v42 = vadd.f32 %v580_v40, %v579_v38 }
 0x208   : > { %v554_v43 = vadd.f32 %v553_v41, %v552_v39  ;;  %v582_v44 = vrot.slane %v581_v42, 1 }
 0x20a   : > { %v583_v46 = vadd.f32 %v582_v44, %v581_v42  ;;  %v584_v48 = vmul.f32 0.015625, %v554_v43 }
 0x20c   : > { %v585_v49 = vmul.f32 0.015625, %v583_v46  ;;  %v586_v50 = vmul.f32 %v584_v48, %v584_v48  ;;  %v588_v51 = vsub.f32 %v987_v47, %v584_v48  ;;  %v589_v52 = vsub.f32 %v985_v45, %v584_v48 }
 0x20d   : > { %v590_v53 = vsub.f32 %v1001_v59, %v584_v48  ;;  %v591_v54 = vsub.f32 %v999_v57, %v584_v48  ;;  %v592_v55 = vsub.f32 %v515_v9, %v584_v48  ;;  %v593_v56 = vsub.f32 %v520_v6, %v584_v48 }
 0x20e   : > { %v587_v58 = vsub.f32 %v585_v49, %v586_v50  ;;  %v594_v60 = vsub.f32 %v525_v23, %v584_v48  ;;  %v595_v61 = vsub.f32 %v530_v20, %v584_v48 }
 0x210   : > { %v596_v62 = vadd.f32 1e-05, %v587_v58 }
 0x212   : > { %879 = vrsqrt.f32 %v596_v62 }
 0x21c   : > { %v880_v63 = vpop.eup %879 }
 0x21d   : > { %v598_v0 = vmul.f32 %v880_v63, %v588_v51  ;;  %v599_v1 = vmul.f32 %v880_v63, %v589_v52  ;;  %v600_v2 = vmul.f32 %v880_v63, %v590_v53  ;;  %v601_v3 = vmul.f32 %v880_v63, %v591_v54 }
 0x21e   : > { %v602_v47 = vmul.f32 %v880_v63, %v592_v55  ;;  %v603_v4 = vmul.f32 %v880_v63, %v593_v56  ;;  %v604_v45 = vmul.f32 %v880_v63, %v594_v60  ;;  %v605_v5 = vmul.f32 %v880_v63, %v595_v61 }
 0x21f   : > { %vm606_vm2 = vcmp.ge.f32.partialorder %v598_v0, 0.0  ;;  %vm607_vm3 = vcmp.ge.f32.partialorder %v599_v1, 0.0  ;;  %vm608_vm4 = vcmp.ge.f32.partialorder %v600_v2, 0.0  ;;  %vm609_vm5 = vcmp.ge.f32.partialorder %v601_v3, 0.0 }
 0x220   : > { %vm610_vm6 = vcmp.ge.f32.partialorder %v602_v47, 0.0  ;;  %vm611_vm7 = vcmp.ge.f32.partialorder %v603_v4, 0.0  ;;  %vm612_vm8 = vcmp.ge.f32.partialorder %v604_v45, 0.0  ;;  %vm613_vm9 = vcmp.ge.f32.partialorder %v605_v5, 0.0 }
 0x221   : > { %v614_v57 = vmul.f32 0.2, %v598_v0  ;;  %v615_v59 = vmul.f32 0.2, %v599_v1  ;;  %v616_v6 = vmul.f32 0.2, %v600_v2 }
 0x222   : > { %v617_v7 = vmul.f32 0.2, %v601_v3  ;;  %v618_v8 = vmul.f32 0.2, %v602_v47  ;;  %v619_v9 = vmul.f32 0.2, %v603_v4 }
 0x223   : > { %v620_v10 = vmul.f32 0.2, %v604_v45  ;;  %v621_v11 = vmul.f32 0.2, %v605_v5  ;;  %v622_v12 = vsel %vm606_vm2, %v598_v0, %v614_v57  ;;  %v623_v13 = vsel %vm607_vm3, %v599_v1, %v615_v59 }
 0x224   : > { %v624_v14 = vsel %vm608_vm4, %v600_v2, %v616_v6  ;;  %v625_v15 = vsel %vm609_vm5, %v601_v3, %v617_v7  ;;  %v626_v16 = vsel %vm610_vm6, %v602_v47, %v618_v8  ;;  %v627_v17 = vsel %vm611_vm7, %v603_v4, %v619_v9  ;;  %630 = vst.msk [vmem:[%s180_s13] sm:$0xff] %vm533_vm1, %v622_v12 }
 0x225   : > { %631 = vst.msk [vmem:[%s180_s13 + $0x8] sm:$0xff] %vm533_vm1, %v623_v13  ;;  %v628_v18 = vsel %vm612_vm8, %v604_v45, %v620_v10  ;;  %v629_v19 = vsel %vm613_vm9, %v605_v5, %v621_v11  ;;  %632 = vst.msk [vmem:[%s180_s13 + $0x10] sm:$0xff] %vm533_vm1, %v624_v14 }
 0x226   : > { %633 = vst.msk [vmem:[%s180_s13 + $0x18] sm:$0xff] %vm533_vm1, %v625_v15  ;;  %634 = vst.msk [vmem:[%s180_s13 + $0x20] sm:$0xff] %vm533_vm1, %v626_v16 }
 0x227   : > { %635 = vst.msk [vmem:[%s180_s13 + $0x28] sm:$0xff] %vm533_vm1, %v627_v17  ;;  %636 = vst.msk [vmem:[%s180_s13 + $0x30] sm:$0xff] %vm533_vm1, %v628_v18 }
 0x228   : > { %637 = vst.msk [vmem:[%s180_s13 + $0x38] sm:$0xff] %vm533_vm1, %v629_v19 }
 0x229 PF: > { %s12_s11 = sadd.s32 1, %s903_s11   ;;  %s1057_s9 = smov %s899_s10 }
 0x22a   : > { %p9_p5 = scmp.ge.s32.totalorder %s12_s11, 4   ;;  %s1058_s10 = smov %s1060_s12 }
 0x22c   :  { %11 = sbr.rel (!%p9_p5) target bundleno = 2 (0x2), region = 62 }

</bundles_post_ra>
